<compile_context>
chip_gen: v6e
topology: v6e:2x2x1
jax: 0.10.0
libtpu: 0.0.40
codegen_flags: <defaults>
</compile_context>

<pallas_src>
import jax
import jax.numpy as jnp
from jax.experimental import pallas as pl
from jax.experimental.pallas import tpu as pltpu


def dqn_kernel(x_ref,
               w1_ref, b1_ref,
               w2_ref, b2_ref,
               w3_ref, b3_ref,
               wh_ref, bh_ref,
               out_ref):
    # x_ref: (C_in, TB) f32 — the batch tile rides the 128-lane axis.
    x = x_ref[...]
    c_in = x_ref.shape[0]

    # ----- layer 1: dropout(identity) -> conv1 (+ folded BN) -> relu --------
    # K = C_in is tiny (e.g. 4); a K=4 matmul occupies the MXU as if K were
    # padded to its full depth, so do this contraction on the (underused) VPU
    # as C_in broadcast multiply-adds over the (32, TB) tile.
    w1 = w1_ref[...]                                           # (32, C_in) f32
    h = w1[:, 0:1] * x[0:1, :]                                 # (32, TB) f32
    for k in range(1, c_in):                                   # static unroll
        h = h + w1[:, k:k + 1] * x[k:k + 1, :]
    h = jnp.maximum(h + b1_ref[...], 0.0)

    # ----- layer 2 (MXU) -----------------------------------------------------
    h = jnp.dot(w2_ref[...], h.astype(jnp.bfloat16),
                preferred_element_type=jnp.float32)            # (128, TB)
    h = jnp.maximum(h + b2_ref[...], 0.0)

    # ----- layer 3 (MXU) -----------------------------------------------------
    h = jnp.dot(w3_ref[...], h.astype(jnp.bfloat16),
                preferred_element_type=jnp.float32)            # (256, TB)
    h = jnp.maximum(h + b3_ref[...], 0.0)

    # ----- head: Linear(256, outputs) -> Softmax over the feature axis ------
    logits = jnp.dot(wh_ref[...], h.astype(jnp.bfloat16),
                     preferred_element_type=jnp.float32)       # (n_out, TB)
    logits = logits + bh_ref[...]
    m = jnp.max(logits, axis=0, keepdims=True)                 # sublane reduce
    e = jnp.exp(logits - m)
    # Exact division (not approx reciprocal) for parity with torch.nn.Softmax.
    # Padded batch columns (>= B) just see bias-only logits here — finite,
    # harmless, and sliced away in the wrapper.
    out_ref[...] = e / jnp.sum(e, axis=0, keepdims=True)


def _round_up(x, m):
    return (x + m - 1) // m * m


def dqn_forward(x, params, *, tile_b=4096, feature_major=False):
    """Eval-mode DQN forward.

    x: PyTorch-style NCL (B, C_in, 1) float32, or — with feature_major=True —
       an already feature-major (C_in, B) float32 array (skips the wrapper
       transpose entirely).
    Returns (B, n_out) softmax probabilities, matching the PyTorch module.
    """
    if feature_major:
        c_in, B = x.shape
        x_fm = x
    else:
        assert x.shape[-1] == 1, "DQN forward requires sequence length 1"
        B, c_in, _ = x.shape
        x_fm = jnp.transpose(x[:, :, 0])                       # (C_in, B)
    n_out = params["wh"].shape[0]

    # Batch tile: large enough to amortize per-grid-step overhead, but split
    # so the grid has >= 2 steps whenever B allows it (v7x megacore sharding).
    tb = min(tile_b, max(128, _round_up(pl.cdiv(B, 2), 128)))
    b_pad = _round_up(B, tb)
    x_fm = jnp.pad(x_fm, ((0, 0), (0, b_pad - B))).astype(jnp.float32)

    resident = lambda i: (0, 0)   # weights/biases: same block every grid step

    flops = 2 * b_pad * (c_in * 32 + 32 * 128 + 128 * 256 + 256 * n_out)
    bytes_accessed = (
        x_fm.size * 4 + b_pad * n_out * 4
        + int(params["w1"].size) * 4
        + sum(int(params[k].size) * 2 for k in ("w2", "w3", "wh"))
        + sum(int(params[k].size) * 4 for k in ("b1", "b2", "b3", "bh")))

    out = pl.pallas_call(
        dqn_kernel,
        out_shape=jax.ShapeDtypeStruct((n_out, b_pad), jnp.float32),
        grid=(b_pad // tb,),
        in_specs=[
            pl.BlockSpec((c_in, tb), lambda i: (0, i)),
            pl.BlockSpec(params["w1"].shape, resident),
            pl.BlockSpec(params["b1"].shape, resident),
            pl.BlockSpec(params["w2"].shape, resident),
            pl.BlockSpec(params["b2"].shape, resident),
            pl.BlockSpec(params["w3"].shape, resident),
            pl.BlockSpec(params["b3"].shape, resident),
            pl.BlockSpec(params["wh"].shape, resident),
            pl.BlockSpec(params["bh"].shape, resident),
        ],
        out_specs=pl.BlockSpec((n_out, tb), lambda i: (0, i)),
        compiler_params=pltpu.CompilerParams(
            dimension_semantics=("parallel",),
            vmem_limit_bytes=48 * 1024 * 1024),
        cost_estimate=pl.CostEstimate(
            flops=flops,
            transcendentals=b_pad * n_out,
            bytes_accessed=bytes_accessed),
    )(x_fm, params["w1"], params["b1"], params["w2"], params["b2"],
      params["w3"], params["b3"], params["wh"], params["bh"])

    # Drop batch padding, return PyTorch-style (B, n_out).
    return jnp.transpose(out[:, :B])


def init_params(key, inputs, outputs, kernel_size):
    """Deterministic synthetic parameters matching the PyTorch module shapes."""
    K = kernel_size
    eps = 1e-5
    keys = iter(jax.random.split(key, 32))

    def conv_bn_layer(c_in, c_out, weight_dtype):
        # Conv1d weight (c_out, c_in, K), bias (c_out,) — PyTorch-style uniform init.
        bound = 1.0 / jnp.sqrt(jnp.float32(c_in * K))
        w = jax.random.uniform(next(keys), (c_out, c_in, K), jnp.float32, -bound, bound)
        b = jax.random.uniform(next(keys), (c_out,), jnp.float32, -bound, bound)
        # BatchNorm1d(c_out): affine params + running stats (eval-mode).
        gamma = jax.random.uniform(next(keys), (c_out,), jnp.float32, 0.5, 1.5)
        beta = jax.random.uniform(next(keys), (c_out,), jnp.float32, -0.1, 0.1)
        run_mean = jnp.zeros((c_out,), jnp.float32)
        run_var = jnp.ones((c_out,), jnp.float32)
        scale = gamma / jnp.sqrt(run_var + eps)
        shift = scale * (b - run_mean) + beta
        # Exact fold: centre tap only (L == 1) and BN scale into the weights.
        w_folded = (scale[:, None] * w[:, :, K // 2]).astype(weight_dtype)  # (c_out, c_in)
        return w_folded, shift.reshape(c_out, 1)

    # Layer 1 stays f32 (consumed on the VPU); layers 2/3/head are bf16 (MXU).
    w1, b1 = conv_bn_layer(inputs, 32, jnp.float32)
    w2, b2 = conv_bn_layer(32, 128, jnp.bfloat16)
    w3, b3 = conv_bn_layer(128, 256, jnp.bfloat16)

    # head: Linear(256, outputs)
    hbound = 1.0 / jnp.sqrt(jnp.float32(256))
    wh = jax.random.uniform(next(keys), (outputs, 256), jnp.float32, -hbound, hbound)
    bh = jax.random.uniform(next(keys), (outputs,), jnp.float32, -hbound, hbound)

    return {
        "w1": w1, "b1": b1,
        "w2": w2, "b2": b2,
        "w3": w3, "b3": b3,
        "wh": wh.astype(jnp.bfloat16), "bh": bh.reshape(outputs, 1),
    }


def dqn_reference(x_ncl, params):
    """Pure-JAX f32 reference using the same folded parameters."""
    x = x_ncl[:, :, 0]                                                   # (B, C_in)
    h = jnp.maximum(x @ params["w1"].astype(jnp.float32).T + params["b1"][:, 0], 0.0)
    h = jnp.maximum(h @ params["w2"].astype(jnp.float32).T + params["b2"][:, 0], 0.0)
    h = jnp.maximum(h @ params["w3"].astype(jnp.float32).T + params["b3"][:, 0], 0.0)
    logits = h @ params["wh"].astype(jnp.float32).T + params["bh"][:, 0]
    return jax.nn.softmax(logits, axis=1)


if __name__ == "__main__":
    # Small shapes consistent with the module: batch=2, inputs=4, L=1,
    # outputs=8, kernelSize=3 (odd, so padding=1 preserves L).
    B, C_IN, N_OUT, KSIZE = 2, 4, 8, 3

    key = jax.random.PRNGKey(0)
    k_x, k_p = jax.random.split(key)
    x = jax.random.normal(k_x, (B, C_IN, 1), dtype=jnp.float32)   # NCL, L=1
    params = init_params(k_p, C_IN, N_OUT, KSIZE)

    out = jax.block_until_ready(dqn_forward(x, params))

    # Sanity: shape, softmax rows sum to 1, and match the f32 reference
    # (bf16 weights/activations inside the kernel -> loose tolerance).
    assert out.shape == (B, N_OUT)
    assert jnp.allclose(jnp.sum(out, axis=1), 1.0, atol=1e-5)
    ref = dqn_reference(x, params)
    assert jnp.allclose(out, ref, atol=3e-2, rtol=3e-2)

    # TODO(synk): training-mode Dropout / batch-statistics BatchNorm are not
    # implemented; this kernel reproduces eval-mode semantics.
    print("KERNEL_OK")
</pallas_src>

<mosaic_0001>
module attributes {stable_mosaic.version = 11 : i64} {
  func.func @dqn_kernel(%arg0: i32, %arg1: memref<4x128xf32, #tpu.memory_space<vmem>>, %arg2: memref<32x4xf32, #tpu.memory_space<vmem>>, %arg3: memref<32x1xf32, #tpu.memory_space<vmem>>, %arg4: memref<128x32xbf16, #tpu.memory_space<vmem>>, %arg5: memref<128x1xf32, #tpu.memory_space<vmem>>, %arg6: memref<256x128xbf16, #tpu.memory_space<vmem>>, %arg7: memref<256x1xf32, #tpu.memory_space<vmem>>, %arg8: memref<8x256xbf16, #tpu.memory_space<vmem>>, %arg9: memref<8x1xf32, #tpu.memory_space<vmem>>, %arg10: memref<8x128xf32, #tpu.memory_space<vmem>>) attributes {dimension_semantics = [#tpu.dimension_semantics<parallel>], iteration_bounds = array<i64: 1>, scalar_prefetch = 0 : i64, scratch_operands = 0 : i64, tpu.core_type = #tpu.core_type<tc>, window_params = [{transform_indices = @transform_0, window_bounds = array<i64: 4, 128>}, {pipeline_mode = #tpu.pipeline_mode<synchronous>, transform_indices = @transform_1, window_bounds = array<i64: 32, 4>}, {pipeline_mode = #tpu.pipeline_mode<synchronous>, transform_indices = @transform_2, window_bounds = array<i64: 32, 1>}, {pipeline_mode = #tpu.pipeline_mode<synchronous>, transform_indices = @transform_3, window_bounds = array<i64: 128, 32>}, {pipeline_mode = #tpu.pipeline_mode<synchronous>, transform_indices = @transform_4, window_bounds = array<i64: 128, 1>}, {pipeline_mode = #tpu.pipeline_mode<synchronous>, transform_indices = @transform_5, window_bounds = array<i64: 256, 128>}, {pipeline_mode = #tpu.pipeline_mode<synchronous>, transform_indices = @transform_6, window_bounds = array<i64: 256, 1>}, {pipeline_mode = #tpu.pipeline_mode<synchronous>, transform_indices = @transform_7, window_bounds = array<i64: 8, 256>}, {pipeline_mode = #tpu.pipeline_mode<synchronous>, transform_indices = @transform_8, window_bounds = array<i64: 8, 1>}, {transform_indices = @transform_9, window_bounds = array<i64: 8, 128>}]} {
    %c0 = arith.constant 0 : index
    %c0_0 = arith.constant 0 : index
    %0 = vector.load %arg1[%c0, %c0_0] : memref<4x128xf32, #tpu.memory_space<vmem>>, vector<4x128xf32>
    %c0_1 = arith.constant 0 : index
    %c0_2 = arith.constant 0 : index
    %1 = vector.load %arg2[%c0_1, %c0_2] : memref<32x4xf32, #tpu.memory_space<vmem>>, vector<32x4xf32>
    %2 = vector.extract_strided_slice %1 {offsets = [0, 0], sizes = [32, 1], strides = [1, 1]} : vector<32x4xf32> to vector<32x1xf32>
    %3 = vector.extract_strided_slice %0 {offsets = [0, 0], sizes = [1, 128], strides = [1, 1]} : vector<4x128xf32> to vector<1x128xf32>
    %4 = vector.broadcast %2 : vector<32x1xf32> to vector<32x128xf32>
    %5 = vector.broadcast %3 : vector<1x128xf32> to vector<32x128xf32>
    %6 = arith.mulf %4, %5 : vector<32x128xf32>
    %7 = vector.extract_strided_slice %1 {offsets = [0, 1], sizes = [32, 1], strides = [1, 1]} : vector<32x4xf32> to vector<32x1xf32>
    %8 = vector.extract_strided_slice %0 {offsets = [1, 0], sizes = [1, 128], strides = [1, 1]} : vector<4x128xf32> to vector<1x128xf32>
    %9 = vector.broadcast %7 : vector<32x1xf32> to vector<32x128xf32>
    %10 = vector.broadcast %8 : vector<1x128xf32> to vector<32x128xf32>
    %11 = arith.mulf %9, %10 : vector<32x128xf32>
    %12 = arith.addf %6, %11 : vector<32x128xf32>
    %13 = vector.extract_strided_slice %1 {offsets = [0, 2], sizes = [32, 1], strides = [1, 1]} : vector<32x4xf32> to vector<32x1xf32>
    %14 = vector.extract_strided_slice %0 {offsets = [2, 0], sizes = [1, 128], strides = [1, 1]} : vector<4x128xf32> to vector<1x128xf32>
    %15 = vector.broadcast %13 : vector<32x1xf32> to vector<32x128xf32>
    %16 = vector.broadcast %14 : vector<1x128xf32> to vector<32x128xf32>
    %17 = arith.mulf %15, %16 : vector<32x128xf32>
    %18 = arith.addf %12, %17 : vector<32x128xf32>
    %19 = vector.extract_strided_slice %1 {offsets = [0, 3], sizes = [32, 1], strides = [1, 1]} : vector<32x4xf32> to vector<32x1xf32>
    %20 = vector.extract_strided_slice %0 {offsets = [3, 0], sizes = [1, 128], strides = [1, 1]} : vector<4x128xf32> to vector<1x128xf32>
    %21 = vector.broadcast %19 : vector<32x1xf32> to vector<32x128xf32>
    %22 = vector.broadcast %20 : vector<1x128xf32> to vector<32x128xf32>
    %23 = arith.mulf %21, %22 : vector<32x128xf32>
    %24 = arith.addf %18, %23 : vector<32x128xf32>
    %c0_3 = arith.constant 0 : index
    %c0_4 = arith.constant 0 : index
    %25 = vector.load %arg3[%c0_3, %c0_4] : memref<32x1xf32, #tpu.memory_space<vmem>>, vector<32x1xf32>
    %26 = vector.broadcast %25 : vector<32x1xf32> to vector<32x128xf32>
    %27 = arith.addf %24, %26 : vector<32x128xf32>
    %cst = arith.constant 0.000000e+00 : f32
    %28 = vector.broadcast %cst : f32 to vector<32x128xf32>
    %29 = arith.maximumf %27, %28 : vector<32x128xf32>
    %c0_5 = arith.constant 0 : index
    %c0_6 = arith.constant 0 : index
    %30 = vector.load %arg4[%c0_5, %c0_6] : memref<128x32xbf16, #tpu.memory_space<vmem>>, vector<128x32xbf16>
    %31 = arith.truncf %29 : vector<32x128xf32> to vector<32x128xbf16>
    %cst_7 = arith.constant dense<0.000000e+00> : vector<128x128xf32>
    %32 = tpu.matmul %30, %31, %cst_7 {dimension_numbers = #tpu.dot_dimension_numbers<[1], [0], [0], [1], [0, 0, 1, 1], [], []>} : vector<128x32xbf16>, vector<32x128xbf16>, vector<128x128xf32> -> vector<128x128xf32>
    %c0_8 = arith.constant 0 : index
    %c0_9 = arith.constant 0 : index
    %33 = vector.load %arg5[%c0_8, %c0_9] : memref<128x1xf32, #tpu.memory_space<vmem>>, vector<128x1xf32>
    %34 = vector.broadcast %33 : vector<128x1xf32> to vector<128x128xf32>
    %35 = arith.addf %32, %34 : vector<128x128xf32>
    %cst_10 = arith.constant 0.000000e+00 : f32
    %36 = vector.broadcast %cst_10 : f32 to vector<128x128xf32>
    %37 = arith.maximumf %35, %36 : vector<128x128xf32>
    %c0_11 = arith.constant 0 : index
    %c0_12 = arith.constant 0 : index
    %38 = vector.load %arg6[%c0_11, %c0_12] : memref<256x128xbf16, #tpu.memory_space<vmem>>, vector<256x128xbf16>
    %39 = arith.truncf %37 : vector<128x128xf32> to vector<128x128xbf16>
    %cst_13 = arith.constant dense<0.000000e+00> : vector<256x128xf32>
    %40 = tpu.matmul %38, %39, %cst_13 {dimension_numbers = #tpu.dot_dimension_numbers<[1], [0], [0], [1], [0, 0, 1, 1], [], []>} : vector<256x128xbf16>, vector<128x128xbf16>, vector<256x128xf32> -> vector<256x128xf32>
    %c0_14 = arith.constant 0 : index
    %c0_15 = arith.constant 0 : index
    %41 = vector.load %arg7[%c0_14, %c0_15] : memref<256x1xf32, #tpu.memory_space<vmem>>, vector<256x1xf32>
    %42 = vector.broadcast %41 : vector<256x1xf32> to vector<256x128xf32>
    %43 = arith.addf %40, %42 : vector<256x128xf32>
    %cst_16 = arith.constant 0.000000e+00 : f32
    %44 = vector.broadcast %cst_16 : f32 to vector<256x128xf32>
    %45 = arith.maximumf %43, %44 : vector<256x128xf32>
    %c0_17 = arith.constant 0 : index
    %c0_18 = arith.constant 0 : index
    %46 = vector.load %arg8[%c0_17, %c0_18] : memref<8x256xbf16, #tpu.memory_space<vmem>>, vector<8x256xbf16>
    %47 = arith.truncf %45 : vector<256x128xf32> to vector<256x128xbf16>
    %cst_19 = arith.constant dense<0.000000e+00> : vector<8x128xf32>
    %48 = tpu.matmul %46, %47, %cst_19 {dimension_numbers = #tpu.dot_dimension_numbers<[1], [0], [0], [1], [0, 0, 1, 1], [], []>} : vector<8x256xbf16>, vector<256x128xbf16>, vector<8x128xf32> -> vector<8x128xf32>
    %c0_20 = arith.constant 0 : index
    %c0_21 = arith.constant 0 : index
    %49 = vector.load %arg9[%c0_20, %c0_21] : memref<8x1xf32, #tpu.memory_space<vmem>>, vector<8x1xf32>
    %50 = vector.broadcast %49 : vector<8x1xf32> to vector<8x128xf32>
    %51 = arith.addf %48, %50 : vector<8x128xf32>
    %cst_22 = arith.constant dense<0xFF800000> : vector<128xf32>
    %52 = vector.multi_reduction <maximumf>, %51, %cst_22 [0] : vector<8x128xf32> to vector<128xf32>
    %53 = vector.shape_cast %52 : vector<128xf32> to vector<1x128xf32>
    %54 = vector.broadcast %53 : vector<1x128xf32> to vector<8x128xf32>
    %55 = arith.subf %51, %54 : vector<8x128xf32>
    %56 = math.exp %55 : vector<8x128xf32>
    %cst_23 = arith.constant dense<0.000000e+00> : vector<128xf32>
    %57 = vector.multi_reduction <add>, %56, %cst_23 [0] : vector<8x128xf32> to vector<128xf32>
    %58 = vector.shape_cast %57 : vector<128xf32> to vector<1x128xf32>
    %59 = vector.broadcast %58 : vector<1x128xf32> to vector<8x128xf32>
    %60 = arith.divf %56, %59 : vector<8x128xf32>
    %c0_24 = arith.constant 0 : index
    %c0_25 = arith.constant 0 : index
    %61 = vector.load %arg10[%c0_24, %c0_25] : memref<8x128xf32, #tpu.memory_space<vmem>>, vector<8x128xf32>
    tpu.vector_store %arg10[%c0_24, %c0_25], %60 {strides = array<i32>} : memref<8x128xf32, #tpu.memory_space<vmem>>, vector<8x128xf32>,
    return
  }
  func.func @transform_0(%arg0: i32) -> (i32, i32) {
    %c0_i32 = arith.constant 0 : i32
    %c0_i32_0 = arith.constant 0 : i32
    return %c0_i32, %arg0 : i32, i32
  }
  func.func @transform_1(%arg0: i32) -> (i32, i32) {
    %c0_i32 = arith.constant 0 : i32
    %c0_i32_0 = arith.constant 0 : i32
    %c0_i32_1 = arith.constant 0 : i32
    return %c0_i32, %c0_i32_0 : i32, i32
  }
  func.func @transform_2(%arg0: i32) -> (i32, i32) {
    %c0_i32 = arith.constant 0 : i32
    %c0_i32_0 = arith.constant 0 : i32
    %c0_i32_1 = arith.constant 0 : i32
    return %c0_i32, %c0_i32_0 : i32, i32
  }
  func.func @transform_3(%arg0: i32) -> (i32, i32) {
    %c0_i32 = arith.constant 0 : i32
    %c0_i32_0 = arith.constant 0 : i32
    %c0_i32_1 = arith.constant 0 : i32
    return %c0_i32, %c0_i32_0 : i32, i32
  }
  func.func @transform_4(%arg0: i32) -> (i32, i32) {
    %c0_i32 = arith.constant 0 : i32
    %c0_i32_0 = arith.constant 0 : i32
    %c0_i32_1 = arith.constant 0 : i32
    return %c0_i32, %c0_i32_0 : i32, i32
  }
  func.func @transform_5(%arg0: i32) -> (i32, i32) {
    %c0_i32 = arith.constant 0 : i32
    %c0_i32_0 = arith.constant 0 : i32
    %c0_i32_1 = arith.constant 0 : i32
    return %c0_i32, %c0_i32_0 : i32, i32
  }
  func.func @transform_6(%arg0: i32) -> (i32, i32) {
    %c0_i32 = arith.constant 0 : i32
    %c0_i32_0 = arith.constant 0 : i32
    %c0_i32_1 = arith.constant 0 : i32
    return %c0_i32, %c0_i32_0 : i32, i32
  }
  func.func @transform_7(%arg0: i32) -> (i32, i32) {
    %c0_i32 = arith.constant 0 : i32
    %c0_i32_0 = arith.constant 0 : i32
    %c0_i32_1 = arith.constant 0 : i32
    return %c0_i32, %c0_i32_0 : i32, i32
  }
  func.func @transform_8(%arg0: i32) -> (i32, i32) {
    %c0_i32 = arith.constant 0 : i32
    %c0_i32_0 = arith.constant 0 : i32
    %c0_i32_1 = arith.constant 0 : i32
    return %c0_i32, %c0_i32_0 : i32, i32
  }
  func.func @transform_9(%arg0: i32) -> (i32, i32) {
    %c0_i32 = arith.constant 0 : i32
    %c0_i32_0 = arith.constant 0 : i32
    return %c0_i32, %arg0 : i32, i32
  }
}

</mosaic_0001>

<bundles_post_ra>
// kernel: tpu_custom_call.1
= control target key start
LH: loop header
LB: loop body
LE: loop exit
PB: predicated region body
PF: predicated region fallthrough
CT: control target
= control target key end

     0   :  { %v1324_v1 = vmov 3   ;;  %v1325_v2 = vmov 1   ;;  %v1326_v4 = vmov 2   ;;  %v1327_v7 = vmov 0   ;;  %s1750_s0 = inlined_call_operand.vmem [shape: f32[4,128], index: 0, kind: input, shape index: {}]   ;;  %s1751_s1 = inlined_call_operand.vmem [shape: f32[32,4], index: 1, kind: input, shape index: {}]   ;;  %s1752_s2 = inlined_call_operand.vmem [shape: f32[32,1], index: 2, kind: input, shape index: {}]   ;;  %s1753_s3 = inlined_call_operand.vmem [shape: bf16[128,32], index: 3, kind: input, shape index: {}]   ;;  %s1754_s4 = inlined_call_operand.vmem [shape: f32[128,1], index: 4, kind: input, shape index: {}]   ;;  %s1755_s5 = inlined_call_operand.vmem [shape: bf16[256,128], index: 5, kind: input, shape index: {}]   ;;  %s1756_s6 = inlined_call_operand.vmem [shape: f32[256,1], index: 6, kind: input, shape index: {}]   ;;  %s1757_s7 = inlined_call_operand.vmem [shape: bf16[8,256], index: 7, kind: input, shape index: {}]   ;;  %s1758_s8 = inlined_call_operand.vmem [shape: f32[8,1], index: 8, kind: input, shape index: {}]   ;;  %s1759_s9 = inlined_call_operand.hbm [shape: f32[8,128], index: 9, kind: output, shape index: {}]  }
   0x1   :  { %v37_v0 = vld [vmem:[%s1751_s1 + $0x10] sm:$0xff]  ;;  %1265 = vset.pattern.permute.xlu0 %v1324_v1  ;;  %1261 = vset.pattern.permute.xlu1 %v1325_v2  ;;  %v38_v3 = vld [vmem:[%s1751_s1 + $0x18] sm:$0xff]  ;;  %v36_v5 = vld [vmem:[%s1751_s1 + $0x8] sm:$0xff] }
   0x2   :  { %132 = vperm.xlu0 %1265, %v37_v0   ;;  %76 = vperm.xlu1 %1261, %v37_v0   ;;  %v35_v6 = vld [vmem:[%s1751_s1] sm:$0xff]  ;;  %v153_v8 = vld [vmem:[%s1752_s2 + $0x10] sm:$0xff]  ;;  %v152_v9 = vld [vmem:[%s1752_s2 + $0x8] sm:$0xff] }
   0x3   :  { %v216_v10 = vld [vmem:[%s1754_s4 + $0x78] sm:$0xff] }
   0x6   :  { %1266 = vset.pattern.permute.xlu0 %v1326_v4  ;;  %80 = vperm.xlu1 %1261, %v38_v3  }
   0x7   :  { %104 = vperm.xlu0 %1266, %v37_v0  }
   0xa   :  { %1262 = vset.pattern.permute.xlu1 %v1326_v4 }
   0xb   :  { %108 = vperm.xlu1 %1262, %v38_v3   ;;  %100 = vperm.xlu0 %1266, %v36_v5  }
   0xf   :  { %1263 = vset.pattern.permute.xlu1 %v1327_v7  ;;  %1269 = vset.pattern.permute.xlu0 %v1327_v7 }
  0x10   :  { %51 = vperm.xlu0 %1269, %v37_v0   ;;  %41 = vperm.xlu1 %1263, %v35_v6  }
  0x14   :  { %56 = vperm.xlu0 %1269, %v38_v3   ;;  %1264 = vset.pattern.permute.xlu1 %v1325_v2 }
  0x15   :  { %68 = vperm.xlu1 %1264, %v35_v6  }
  0x18   :  { %46 = vperm.xlu0 %1269, %v36_v5  }
  0x19   :  { %72 = vperm.xlu1 %1264, %v36_v5  }
  0x1c   :  { %167 = vperm.xlu0 %1269, %v153_v8  }
  0x1d   :  { %1267 = vset.pattern.permute.xlu1 %v1324_v1 }
  0x1e   :  { %136 = vperm.xlu1 %1267, %v38_v3  }
  0x20   :  { %162 = vperm.xlu0 %1269, %v152_v9  }
  0x22   :  { %1268 = vset.pattern.permute.xlu1 %v1326_v4 }
  0x23   :  { %96 = vperm.xlu1 %1268, %v35_v6  }
  0x24   :  { %14 = vsyncpa [#allocation3], 0  ;;  %294 = vperm.xlu0 %1269, %v216_v10   ;;  %v214_v11 = vld [vmem:[%s1754_s4 + $0x68] sm:$0xff]  ;;  %v212_v12 = vld [vmem:[%s1754_s4 + $0x58] sm:$0xff]  ;;  %vm337_vm0 = vcmask 261120   ;;  %v59_v3 = vlaneseq }
  0x25   :  { %v210_v13 = vld [vmem:[%s1754_s4 + $0x48] sm:$0xff]  ;;  %v154_v14 = vld [vmem:[%s1752_s2 + $0x18] sm:$0xff]  ;;  %v151_v16 = vld [vmem:[%s1752_s2] sm:$0xff] }
  0x26   :  { %v208_v15 = vld [vmem:[%s1754_s4 + $0x38] sm:$0xff]  ;;  %v206_v17 = vld [vmem:[%s1754_s4 + $0x28] sm:$0xff]  ;;  %v215_v18 = vld [vmem:[%s1754_s4 + $0x70] sm:$0xff] }
  0x27   :  { %1270 = vset.pattern.permute.xlu1 %v1324_v1  ;;  %v1272_v19 = vld [vmem:[%s1753_s3] sm:$0xff]   ;;  %v204_v20 = vld [vmem:[%s1754_s4 + $0x18] sm:$0xff]  ;;  %v202_v22 = vld [vmem:[%s1754_s4 + $0x8] sm:$0xff] }
  0x28   :  { %284 = vperm.xlu0 %1269, %v214_v11   ;;  %124 = vperm.xlu1 %1270, %v35_v6   ;;  %v213_v21 = vld [vmem:[%s1754_s4 + $0x60] sm:$0xff]  ;;  %v211_v23 = vld [vmem:[%s1754_s4 + $0x50] sm:$0xff]  ;;  %v546_v24 = vld [vmem:[%s1756_s6 + $0xf8] sm:$0xff] }
  0x29   :  { %1192 = vmatprep.mubr.msk.bf16.mxu0 %vm337_vm0, %v1272_v19  ;;  %v209_v25 = vld [vmem:[%s1754_s4 + $0x40] sm:$0xff]  ;;  %v530_v26 = vld [vmem:[%s1756_s6 + $0x78] sm:$0xff]  ;;  %v207_v27 = vld [vmem:[%s1754_s4 + $0x30] sm:$0xff] }
  0x2a   :  { %v544_v28 = vld [vmem:[%s1756_s6 + $0xe8] sm:$0xff]  ;;  %v205_v29 = vld [vmem:[%s1754_s4 + $0x20] sm:$0xff]  ;;  %v203_v31 = vld [vmem:[%s1754_s4 + $0x10] sm:$0xff] }
  0x2b   :  { %v528_v30 = vld [vmem:[%s1756_s6 + $0x68] sm:$0xff]  ;;  %v542_v32 = vld [vmem:[%s1756_s6 + $0xd8] sm:$0xff]  ;;  %v201_v33 = vld [vmem:[%s1754_s4] sm:$0xff] }
  0x2c   :  { %274 = vperm.xlu0 %1269, %v212_v12   ;;  %128 = vperm.xlu1 %1270, %v36_v5   ;;  %v526_v34 = vld [vmem:[%s1756_s6 + $0x58] sm:$0xff]  ;;  %v545_v35 = vld [vmem:[%s1756_s6 + $0xf0] sm:$0xff]  ;;  %v540_v36 = vld [vmem:[%s1756_s6 + $0xc8] sm:$0xff] }
  0x2d   :  { %v529_v37 = vld [vmem:[%s1756_s6 + $0x70] sm:$0xff]  ;;  %v524_v38 = vld [vmem:[%s1756_s6 + $0x48] sm:$0xff]  ;;  %v543_v39 = vld [vmem:[%s1756_s6 + $0xe0] sm:$0xff] }
  0x2e   :  { %v538_v40 = vld [vmem:[%s1756_s6 + $0xb8] sm:$0xff]  ;;  %v527_v41 = vld [vmem:[%s1756_s6 + $0x60] sm:$0xff]  ;;  %v541_v43 = vld [vmem:[%s1756_s6 + $0xd0] sm:$0xff] }
  0x2f   :  { %v522_v42 = vld [vmem:[%s1756_s6 + $0x38] sm:$0xff]  ;;  %v536_v44 = vld [vmem:[%s1756_s6 + $0xa8] sm:$0xff]  ;;  %v525_v45 = vld [vmem:[%s1756_s6 + $0x50] sm:$0xff] }
  0x30   :  { %264 = vperm.xlu0 %1269, %v210_v13   ;;  %1271 = vset.pattern.permute.xlu1 %v1327_v7  ;;  %v520_v46 = vld [vmem:[%s1756_s6 + $0x28] sm:$0xff]  ;;  %v539_v47 = vld [vmem:[%s1756_s6 + $0xc0] sm:$0xff]  ;;  %v534_v48 = vld [vmem:[%s1756_s6 + $0x98] sm:$0xff]  ;;  %v60_v7 = vshrl.u32 %v59_v3, 7 }
  0x31   :  { %172 = vperm.xlu1 %1271, %v154_v14   ;;  %v523_v49 = vld [vmem:[%s1756_s6 + $0x40] sm:$0xff]  ;;  %v518_v50 = vld [vmem:[%s1756_s6 + $0x18] sm:$0xff]  ;;  %v537_v51 = vld [vmem:[%s1756_s6 + $0xb0] sm:$0xff] }
  0x32   :  { %v532_v52 = vld [vmem:[%s1756_s6 + $0x88] sm:$0xff]  ;;  %v521_v53 = vld [vmem:[%s1756_s6 + $0x30] sm:$0xff]  ;;  %v535_v56 = vld [vmem:[%s1756_s6 + $0xa0] sm:$0xff]  ;;  %v61_v9 = vsub.s32 0, %v60_v7  ;;  %v85_v11 = vsub.s32 1, %v60_v7 }
  0x33   :  { %v516_v55 = vld [vmem:[%s1756_s6 + $0x8] sm:$0xff]  ;;  %v519_v59 = vld [vmem:[%s1756_s6 + $0x20] sm:$0xff]  ;;  %v533_v62 = vld [vmem:[%s1756_s6 + $0x90] sm:$0xff] }
  0x34   :  { %254 = vperm.xlu0 %1269, %v208_v15   ;;  %v517_v63 = vld [vmem:[%s1756_s6 + $0x10] sm:$0xff]  ;;  %v531_v2 = vld [vmem:[%s1756_s6 + $0x80] sm:$0xff]  ;;  %v1273_v3 = vld [vmem:[%s1753_s3 + $0x8] sm:$0xff]  }
  0x35   :  { %157 = vperm.xlu1 %1271, %v151_v16   ;;  %v515_v6 = vld [vmem:[%s1756_s6] sm:$0xff]  ;;  %v113_v16 = vsub.s32 2, %v60_v7 }
  0x36   :  { %v1013_v10 = vld [vmem:[%s1758_s8] sm:$0xff] }
  0x37   :  { %v34_v12 = vld [vmem:[%s1750_s0] sm:$0xf] }
  0x38   :  { %244 = vperm.xlu0 %1269, %v206_v17   ;;  %v62_v14 = vrot.slane %v34_v12, %v61_v9  ;;  %v86_v17 = vrot.slane %v34_v12, %v85_v11  ;;  %v1279_v9 = vld [vmem:[%s1753_s3 + $0x38] sm:$0xff]  }
  0x39   :  { %289 = vperm.xlu1 %1271, %v215_v18   ;;  %v141_v18 = vsub.s32 3, %v60_v7  ;;  %v1277_v7 = vld [vmem:[%s1753_s3 + $0x28] sm:$0xff]  }
  0x3c   :  { %234 = vperm.xlu0 %1269, %v204_v20   ;;  %v114_v20 = vrot.slane %v34_v12, %v113_v16 }
  0x3d   :  { %279 = vperm.xlu1 %1271, %v213_v21  }
  0x40   :  { %224 = vperm.xlu0 %1269, %v202_v22  }
  0x41   :  { %269 = vperm.xlu1 %1271, %v211_v23  }
  0x44   :  { %704 = vperm.xlu0 %1269, %v546_v24   ;;  %v142_v24 = vrot.slane %v34_v12, %v141_v18 }
  0x45   :  { %259 = vperm.xlu1 %1271, %v209_v25  }
  0x48   :  { %624 = vperm.xlu0 %1269, %v530_v26  }
  0x49   :  { %249 = vperm.xlu1 %1271, %v207_v27  }
  0x4c   :  { %694 = vperm.xlu0 %1269, %v544_v28  }
  0x4d   :  { %239 = vperm.xlu1 %1271, %v205_v29  }
  0x50   :  { %614 = vperm.xlu0 %1269, %v528_v30  }
  0x51   :  { %229 = vperm.xlu1 %1271, %v203_v31  }
  0x54   :  { %684 = vperm.xlu0 %1269, %v542_v32  }
  0x55   :  { %219 = vperm.xlu1 %1271, %v201_v33  }
  0x58   :  { %604 = vperm.xlu0 %1269, %v526_v34  }
  0x59   :  { %699 = vperm.xlu1 %1271, %v545_v35  }
  0x5c   :  { %674 = vperm.xlu0 %1269, %v540_v36  }
  0x5d   :  { %619 = vperm.xlu1 %1271, %v529_v37  }
  0x60   :  { %594 = vperm.xlu0 %1269, %v524_v38  }
  0x61   :  { %689 = vperm.xlu1 %1271, %v543_v39  }
  0x64   :  { %664 = vperm.xlu0 %1269, %v538_v40  }
  0x65   :  { %609 = vperm.xlu1 %1271, %v527_v41  }
  0x68   :  { %584 = vperm.xlu0 %1269, %v522_v42  }
  0x69   :  { %679 = vperm.xlu1 %1271, %v541_v43  }
  0x6c   :  { %654 = vperm.xlu0 %1269, %v536_v44  }
  0x6d   :  { %599 = vperm.xlu1 %1271, %v525_v45  }
  0x70   :  { %574 = vperm.xlu0 %1269, %v520_v46  }
  0x71   :  { %669 = vperm.xlu1 %1271, %v539_v47  }
  0x74   :  { %644 = vperm.xlu0 %1269, %v534_v48  }
  0x75   :  { %589 = vperm.xlu1 %1271, %v523_v49  }
  0x78   :  { %564 = vperm.xlu0 %1269, %v518_v50  }
  0x79   :  { %659 = vperm.xlu1 %1271, %v537_v51  }
  0x7c   :  { %634 = vperm.xlu0 %1269, %v532_v52  }
  0x7d   :  { %v77_v54 = vpop.permute.xlu1 %76  ;;  %579 = vperm.xlu1 %1271, %v521_v53   ;;  %v133_v57 = vpop.permute.xlu0 %132 }
  0x7e   :  { %v89_v23 = vmul.f32 %v86_v17, %v77_v54  ;;  %v145_v32 = vmul.f32 %v142_v24, %v133_v57 }
  0x80   :  { %554 = vperm.xlu0 %1269, %v516_v55  }
  0x81   :  { %v81_v58 = vpop.permute.xlu1 %80  ;;  %649 = vperm.xlu1 %1271, %v535_v56  }
  0x82   :  { %v105_v60 = vpop.permute.xlu0 %104  ;;  %v90_v30 = vmul.f32 %v86_v17, %v81_v58 }
  0x83   :  { %v117_v25 = vmul.f32 %v114_v20, %v105_v60 }
  0x85   :  { %569 = vperm.xlu1 %1271, %v519_v59  }
  0x86   :  { %v109_v61 = vpop.permute.xlu1 %108  ;;  %v101_v1 = vpop.permute.xlu0 %100 }
  0x87   :  { %v116_v33 = vmul.f32 %v114_v20, %v101_v1  ;;  %v118_v38 = vmul.f32 %v114_v20, %v109_v61 }
  0x89   :  { %639 = vperm.xlu1 %1271, %v533_v62  }
  0x8b   :  { %v42_v0 = vpop.permute.xlu1 %41  ;;  %v52_v5 = vpop.permute.xlu0 %51 }
  0x8c   :  { %v65_v19 = vmul.f32 %v62_v14, %v52_v5  ;;  %v63_v41 = vmul.f32 %v62_v14, %v42_v0  ;;  %v1275_v5 = vld [vmem:[%s1753_s3 + $0x18] sm:$0xff]  }
  0x8d   :  { %559 = vperm.xlu1 %1271, %v517_v63  }
  0x8e   :  { %v93_v26 = vadd.f32 %v89_v23, %v65_v19 }
  0x8f   :  { %v57_v13 = vpop.permute.xlu0 %56 }
  0x90   :  { %v69_v4 = vpop.permute.xlu1 %68  ;;  %v66_v27 = vmul.f32 %v62_v14, %v57_v13  ;;  %v121_v36 = vadd.f32 %v117_v25, %v93_v26 }
  0x91   :  { %629 = vperm.xlu1 %1271, %v531_v2   ;;  %v87_v37 = vmul.f32 %v86_v17, %v69_v4  ;;  %v1274_v4 = vld [vmem:[%s1753_s3 + $0x10] sm:$0xff]  }
  0x92   :  { %v94_v34 = vadd.f32 %v90_v30, %v66_v27  ;;  %v149_v44 = vadd.f32 %v145_v32, %v121_v36 }
  0x93   :  { %v47_v21 = vpop.permute.xlu0 %46  ;;  %v91_v48 = vadd.f32 %v87_v37, %v63_v41 }
  0x94   :  { %v73_v8 = vpop.permute.xlu1 %72  ;;  %v64_v28 = vmul.f32 %v62_v14, %v47_v21  ;;  %v122_v47 = vadd.f32 %v118_v38, %v94_v34 }
  0x95   :  { %549 = vperm.xlu1 %1271, %v515_v6   ;;  %v88_v29 = vmul.f32 %v86_v17, %v73_v8  ;;  %v1276_v6 = vld [vmem:[%s1753_s3 + $0x20] sm:$0xff]   ;;  %v1278_v8 = vld [vmem:[%s1753_s3 + $0x30] sm:$0xff]  }
  0x97   :  { %v92_v35 = vadd.f32 %v88_v29, %v64_v28  ;;  %v168_v42 = vpop.permute.xlu0 %167 }
  0x98   :  { %v177_v49 = vadd.f32 %v168_v42, %v149_v44 }
  0x99   :  { %1016 = vperm.xlu1 %1271, %v1013_v10   ;;  %v137_v15 = vpop.permute.xlu1 %136  ;;  %v120_v46 = vadd.f32 %v116_v33, %v92_v35  ;;  %v1280_v10 = vld [vmem:[%s1755_s5] sm:$0xff]  }
  0x9a   :  { %v146_v39 = vmul.f32 %v142_v24, %v137_v15  ;;  %v181_v57 = vmax.f32 %v177_v49, 0.0  ;;  %1224 = vmatprep.mubr.bf16.mxu1 %v1280_v10 }
  0x9b   :  { %v163_v56 = vpop.permute.xlu0 %162 }
  0x9c   :  { %v150_v52 = vadd.f32 %v146_v39, %v122_v47 }
  0x9e   :  { %v97_v22 = vpop.permute.xlu1 %96 }
  0x9f   :  { %v115_v45 = vmul.f32 %v114_v20, %v97_v22  ;;  %v295_v15 = vpop.permute.xlu0 %294 }
  0xa1   :  { %v119_v54 = vadd.f32 %v115_v45, %v91_v48 }
  0xa3   :  { %v125_v31 = vpop.permute.xlu1 %124  ;;  %v285_v20 = vpop.permute.xlu0 %284 }
  0xa4   :  { %v143_v50 = vmul.f32 %v142_v24, %v125_v31 }
  0xa6   :  { %v147_v60 = vadd.f32 %v143_v50, %v119_v54 }
  0xa7   :  { %v129_v40 = vpop.permute.xlu1 %128  ;;  %v275_v25 = vpop.permute.xlu0 %274 }
  0xa8   :  { %v144_v43 = vmul.f32 %v142_v24, %v129_v40 }
  0xaa   :  { %v148_v51 = vadd.f32 %v144_v43, %v120_v46 }
  0xab   :  { %v265_v30 = vpop.permute.xlu0 %264 }
  0xac   :  { %v173_v53 = vpop.permute.xlu1 %172  ;;  %v176_v58 = vadd.f32 %v163_v56, %v148_v51 }
  0xad   :  { %v178_v55 = vadd.f32 %v173_v53, %v150_v52 }
  0xae   :  { %v180_v1 = vmax.f32 %v176_v58, 0.0 }
  0xaf   :  { %v182_v59 = vmax.f32 %v178_v55, 0.0  ;;  %v255_v42 = vpop.permute.xlu0 %254 }
  0xb0   :  { %v158_v61 = vpop.permute.xlu1 %157 }
  0xb1   :  { %v175_v62 = vadd.f32 %v158_v61, %v147_v60  ;;  %v200_v63 = vpack.c.bf16 %v182_v59, %v181_v57 }
  0xb3   :  { %v179_v0 = vmax.f32 %v175_v62, 0.0  ;;  %1188 = vmatprep.subr.bf16.mxu0 %v200_v63  ;;  %v245_v53 = vpop.permute.xlu0 %244 }
  0xb4   :  { %1189 = vmatpush3.bf16.msra.mxu0 %v200_v63  ;;  %v290_v17 = vpop.permute.xlu1 %289 }
  0xb5   :  { %v199_v2 = vpack.c.bf16 %v180_v1, %v179_v0 }
  0xb7   :  { %1190 = vmatprep.subr.bf16.mxu0 %v199_v2  ;;  %v235_v63 = vpop.permute.xlu0 %234 }
  0xb8   :  { %1191 = vmatpush3.bf16.msra.mxu0 %v199_v2  ;;  %v280_v22 = vpop.permute.xlu1 %279 }
  0xbb   :  { %1193 = vmatmul.mubr.msk.bf16.vlgmr.msra.gmra.mxu0 %vm337_vm0, %v1273_v3 }
  0xbc   :  { %1196 = vmatprep.mubr.msk.bf16.mxu0 %vm337_vm0, %v1274_v4  ;;  %v270_v27 = vpop.permute.xlu1 %269 }
  0xc0   :  { %v260_v33 = vpop.permute.xlu1 %259 }
  0xc3   :  { %1197 = vmatmul.mubr.msk.bf16.gmra.mxu0 %vm337_vm0, %v1275_v5 }
  0xc4   :  { %1200 = vmatprep.mubr.msk.bf16.mxu0 %vm337_vm0, %v1276_v6  ;;  %v250_v47 = vpop.permute.xlu1 %249 }
  0xc8   :  { %v240_v57 = vpop.permute.xlu1 %239 }
  0xcb   :  { %1201 = vmatmul.mubr.msk.bf16.gmra.mxu0 %vm337_vm0, %v1277_v7 }
  0xcc   :  { %1204 = vmatprep.mubr.msk.bf16.mxu0 %vm337_vm0, %v1278_v8  ;;  %v230_v2 = vpop.permute.xlu1 %229  ;;  %v225_v8 = vpop.permute.xlu0 %224 }
  0xd3   :  { %1205 = vmatmul.mubr.msk.bf16.gmra.mxu0 %vm337_vm0, %v1279_v9 }
 0x17b   :  { %v1588_v11 = vpop.f32.mrf.mxu0 }
 0x17c   :  { %v405_v6 = vadd.f32 %v1588_v11, %v230_v2  ;;  %v1281_v11 = vld [vmem:[%s1755_s5 + $0x8] sm:$0xff]  }
 0x17d   :  { %v1590_v12 = vpop.f32.mrf.mxu0 }
 0x17f   :  { %v1195_v13 = vpop.f32.mrf.mxu0 }
 0x180   :  { %v408_v3 = vadd.f32 %v1195_v13, %v235_v63 }
 0x181   :  { %v1592_v14 = vpop.f32.mrf.mxu0 }
 0x182   :  { %v462_v9 = vmax.f32 %v408_v3, 0.0  ;;  %v400_v10 = vadd.f32 %v1592_v14, %v225_v8  ;;  %v1282_v14 = vld [vmem:[%s1755_s5 + $0x10] sm:$0xff]  }
 0x183   :  { %v1198_v16 = vpop.f32.mrf.mxu0 }
 0x184   :  { %v421_v58 = vadd.f32 %v1198_v16, %v250_v47  ;;  %v220_v16 = vpop.permute.xlu1 %219  ;;  %v460_v13 = vmax.f32 %v400_v10, 0.0 }
 0x185   :  { %v412_v18 = vpop.f32.mrf.mxu0 }
 0x186   :  { %v465_v0 = vmax.f32 %v421_v58, 0.0  ;;  %v413_v1 = vadd.f32 %v412_v18, %v240_v57  ;;  %v397_v18 = vadd.f32 %v1590_v12, %v220_v16  ;;  %v1283_v12 = vld [vmem:[%s1755_s5 + $0x18] sm:$0xff]  }
 0x187   :  { %v1199_v19 = vpop.f32.mrf.mxu0 }
 0x188   :  { %v424_v54 = vadd.f32 %v1199_v19, %v255_v42  ;;  %v463_v7 = vmax.f32 %v413_v1, 0.0 }
 0x189   :  { %v415_v21 = vpop.f32.mrf.mxu0 }
 0x18a   :  { %v466_v60 = vmax.f32 %v424_v54, 0.0  ;;  %v416_v61 = vadd.f32 %v415_v21, %v245_v53 }
 0x18b   :  { %v1202_v23 = vpop.f32.mrf.mxu0 }
 0x18c   :  { %v437_v43 = vadd.f32 %v1202_v23, %v270_v27  ;;  %v510_v4 = vpack.c.bf16 %v466_v60, %v465_v0  ;;  %v464_v5 = vmax.f32 %v416_v61, 0.0  ;;  %v1285_v23 = vld [vmem:[%s1755_s5 + $0x28] sm:$0xff]  }
 0x18d   :  { %v428_v24 = vpop.f32.mrf.mxu0  ;;  %v1289_v27 = vld [vmem:[%s1755_s5 + $0x48] sm:$0xff]  }
 0x18e   :  { %v469_v51 = vmax.f32 %v437_v43, 0.0  ;;  %v429_v52 = vadd.f32 %v428_v24, %v260_v33  ;;  %v1286_v24 = vld [vmem:[%s1755_s5 + $0x30] sm:$0xff]   ;;  %v1295_v33 = vld [vmem:[%s1755_s5 + $0x78] sm:$0xff]  }
 0x18f   :  { %v1203_v26 = vpop.f32.mrf.mxu0 }
 0x190   :  { %v440_v38 = vadd.f32 %v1203_v26, %v275_v25  ;;  %v467_v59 = vmax.f32 %v429_v52, 0.0  ;;  %v1287_v25 = vld [vmem:[%s1755_s5 + $0x38] sm:$0xff]   ;;  %v1288_v26 = vld [vmem:[%s1755_s5 + $0x40] sm:$0xff]  }
 0x191   :  { %v431_v28 = vpop.f32.mrf.mxu0  ;;  %v1681_v52 = vld [vmem:[%s1757_s7] sm:$0xff]  ;;  %s1328_s7 = smov [#allocation2]  }
 0x192   :  { %v470_v48 = vmax.f32 %v440_v38, 0.0  ;;  %v432_v49 = vadd.f32 %v431_v28, %v265_v30  ;;  %v1290_v28 = vld [vmem:[%s1755_s5 + $0x50] sm:$0xff]   ;;  %v1292_v30 = vld [vmem:[%s1755_s5 + $0x60] sm:$0xff]   ;;  %v1131_v54 = vcombine.high %v1681_v52, %v1681_v52  ;;  %s1090_s23 = sshll.u32 %s1328_s7, 4  ;;  %s1091_s23 = int_to_ptr.vmem [resolvable:$true] %s1090_s23 }
 0x193   :  { %v1206_v29 = vpop.f32.mrf.mxu0  ;;  %s1302_s24 = scalar_lea.vmem %s1091_s23, 128  ;;  %p1307_p1 = scmp.lt.s32.totalorder %s1091_s23, %s1091_s23 }
 0x194   :  { %v453_v32 = vadd.f32 %v1206_v29, %v290_v17  ;;  %v512_v55 = vpack.c.bf16 %v470_v48, %v469_v51  ;;  %v468_v56 = vmax.f32 %v432_v49, 0.0  ;;  %v461_v17 = vmax.f32 %v405_v6, 0.0  ;;  %v1291_v29 = vld [vmem:[%s1755_s5 + $0x58] sm:$0xff]   ;;  %1058 = vmatprep.mubr.bf16.mxu0 %v1131_v54  ;;  %p1303_p0 = scmp.ne.s32.totalorder %s1091_s23, %s1302_s24  ;;  %p1308_p2 = scmp.lt.s32.totalorder %s1302_s24, %s1302_s24 }
 0x195   :  { %v444_v31 = vpop.f32.mrf.mxu0 }
 0x196   :  { %v445_v35 = vadd.f32 %v444_v31, %v280_v22  ;;  %v473_v39 = vmax.f32 %v453_v32, 0.0  ;;  %v511_v62 = vpack.c.bf16 %v468_v56, %v467_v59  ;;  %v508_v19 = vpack.c.bf16 %v462_v9, %v461_v17  ;;  %v1284_v22 = vld [vmem:[%s1755_s5 + $0x20] sm:$0xff]   ;;  %v1293_v31 = vld [vmem:[%s1755_s5 + $0x68] sm:$0xff]   ;;  %v1294_v32 = vld [vmem:[%s1755_s5 + $0x70] sm:$0xff]   ;;  %p1309_p3 = por %p1308_p2, %p1307_p1 }
 0x197   :  { %v1207_v34 = vpop.f32.mrf.mxu0 }
 0x198   :  { %v456_v36 = vadd.f32 %v1207_v34, %v295_v15  ;;  %v471_v44 = vmax.f32 %v445_v35, 0.0  ;;  %v509_v15 = vpack.c.bf16 %v464_v5, %v463_v7  ;;  %v1642_v34 = vpop.permute.xlu1 %699  ;;  %v1644_v35 = vpop.permute.xlu0 %704  ;;  %p1310_p4 = pnand %p1309_p3, %p1303_p0 }
 0x199   :  { %v447_v37 = vpop.f32.mrf.mxu0 }
 0x19a   :  { %v474_v40 = vmax.f32 %v456_v36, 0.0  ;;  %v448_v41 = vadd.f32 %v447_v37, %v285_v20  ;;  %v459_v20 = vmax.f32 %v397_v18, 0.0 }
 0x19c   :  { %v472_v45 = vmax.f32 %v448_v41, 0.0  ;;  %v514_v46 = vpack.c.bf16 %v474_v40, %v473_v39  ;;  %v507_v21 = vpack.c.bf16 %v460_v13, %v459_v20  ;;  %v1646_v36 = vpop.permute.xlu1 %619  ;;  %v1648_v37 = vpop.permute.xlu0 %624 }
 0x19e   :  { %v513_v50 = vpack.c.bf16 %v472_v45, %v471_v44  ;;  %1208 = vmatprep.subr.bf16.mxu1 %v514_v46 }
 0x19f   :  { %1209 = vmatpush3.bf16.msra.mxu1 %v514_v46 }
 0x1a0   :  { %1210 = vmatprep.subr.bf16.mxu1 %v513_v50  ;;  %v1650_v38 = vpop.permute.xlu1 %689  ;;  %v1652_v39 = vpop.permute.xlu0 %694 }
 0x1a3   :  { %1211 = vmatpush3.bf16.msra.mxu1 %v513_v50 }
 0x1a4   :  { %1212 = vmatprep.subr.bf16.mxu1 %v512_v55  ;;  %v1654_v40 = vpop.permute.xlu1 %609  ;;  %v1656_v41 = vpop.permute.xlu0 %614 }
 0x1a7   :  { %1213 = vmatpush3.bf16.msra.mxu1 %v512_v55 }
 0x1a8   :  { %1214 = vmatprep.subr.bf16.mxu1 %v511_v62  ;;  %v1658_v42 = vpop.permute.xlu1 %679  ;;  %v1660_v43 = vpop.permute.xlu0 %684 }
 0x1ab   :  { %1215 = vmatpush3.bf16.msra.mxu1 %v511_v62 }
 0x1ac   :  { %1216 = vmatprep.subr.bf16.mxu1 %v510_v4  ;;  %v1662_v44 = vpop.permute.xlu1 %599  ;;  %v1664_v45 = vpop.permute.xlu0 %604 }
 0x1af   :  { %1217 = vmatpush3.bf16.msra.mxu1 %v510_v4 }
 0x1b0   :  { %1218 = vmatprep.subr.bf16.mxu1 %v509_v15  ;;  %v1666_v46 = vpop.permute.xlu1 %669  ;;  %v1668_v47 = vpop.permute.xlu0 %674 }
 0x1b3   :  { %1219 = vmatpush3.bf16.msra.mxu1 %v509_v15 }
 0x1b4   :  { %1220 = vmatprep.subr.bf16.mxu1 %v508_v19  ;;  %v1670_v48 = vpop.permute.xlu1 %589  ;;  %v1672_v49 = vpop.permute.xlu0 %594 }
 0x1b7   :  { %1221 = vmatpush3.bf16.msra.mxu1 %v508_v19 }
 0x1b8   :  { %1222 = vmatprep.subr.bf16.mxu1 %v507_v21  ;;  %v1674_v50 = vpop.permute.xlu1 %659  ;;  %v1676_v51 = vpop.permute.xlu0 %664 }
 0x1bb   :  { %1223 = vmatpush3.bf16.msra.mxu1 %v507_v21 }
 0x1bc   :  { %v580_v53 = vpop.permute.xlu1 %579  ;;  %v585_v55 = vpop.permute.xlu0 %584 }
 0x1be   :  { %1225 = vmatmul.mubr.bf16.vlgmr.msra.gmra.mxu1 %v1281_v11 }
 0x1bf   :  { %1228 = vmatprep.mubr.bf16.mxu1 %v1282_v14 }
 0x1c0   :  { %v1685_v56 = vpop.permute.xlu1 %649  ;;  %v1687_v57 = vpop.permute.xlu0 %654 }
 0x1c4   :  { %v570_v58 = vpop.permute.xlu1 %569  ;;  %v575_v59 = vpop.permute.xlu0 %574 }
 0x1c6   :  { %1229 = vmatmul.mubr.bf16.gmra.mxu1 %v1283_v12 }
 0x1c7   :  { %1232 = vmatprep.mubr.bf16.mxu1 %v1284_v22 }
 0x1c8   :  { %v1689_v60 = vpop.permute.xlu1 %639  ;;  %v1691_v61 = vpop.permute.xlu0 %644 }
 0x1cc   :  { %v560_v62 = vpop.permute.xlu1 %559  ;;  %v565_v63 = vpop.permute.xlu0 %564 }
 0x1ce   :  { %1233 = vmatmul.mubr.bf16.gmra.mxu1 %v1285_v23 }
 0x1cf   :  { %1236 = vmatprep.mubr.bf16.mxu1 %v1286_v24 }
 0x1d0   :  { %v1693_v0 = vpop.permute.xlu1 %629  ;;  %v1695_v1 = vpop.permute.xlu0 %634 }
 0x1d4   :  { %v550_v5 = vpop.permute.xlu1 %549  ;;  %v555_v9 = vpop.permute.xlu0 %554 }
 0x1d6   :  { %1237 = vmatmul.mubr.bf16.gmra.mxu1 %v1287_v25 }
 0x1d7   :  { %1240 = vmatprep.mubr.bf16.mxu1 %v1288_v26 }
 0x1de   :  { %1241 = vmatmul.mubr.bf16.gmra.mxu1 %v1289_v27 }
 0x1df   :  { %1244 = vmatprep.mubr.bf16.mxu1 %v1290_v28 }
 0x1e6   :  { %1245 = vmatmul.mubr.bf16.gmra.mxu1 %v1291_v29 }
 0x1e7   :  { %1248 = vmatprep.mubr.bf16.mxu1 %v1292_v30 }
 0x1ee   :  { %1249 = vmatmul.mubr.bf16.gmra.mxu1 %v1293_v31 }
 0x1ef   :  { %1252 = vmatprep.mubr.bf16.mxu1 %v1294_v32 }
 0x1f6   :  { %1253 = vmatmul.mubr.bf16.gmra.mxu1 %v1295_v33 }
 0x27e   :  { %v1226_v2 = vpop.f32.mrf.mxu1 }
 0x27f   :  { %v846_v4 = vadd.f32 %v1226_v2, %v560_v62 }
 0x280   :  { %v837_v3 = vpop.f32.mrf.mxu1 }
 0x281   :  { %v838_v7 = vadd.f32 %v837_v3, %v550_v5  ;;  %v966_v15 = vmax.f32 %v846_v4, 0.0 }
 0x282   :  { %v1227_v6 = vpop.f32.mrf.mxu1 }
 0x283   :  { %v849_v8 = vadd.f32 %v1227_v6, %v565_v63  ;;  %v964_v19 = vmax.f32 %v838_v7, 0.0 }
 0x284   :  { %v840_v10 = vpop.f32.mrf.mxu1 }
 0x285   :  { %v967_v16 = vmax.f32 %v849_v8, 0.0  ;;  %v841_v17 = vadd.f32 %v840_v10, %v555_v9 }
 0x286   :  { %v1230_v18 = vpop.f32.mrf.mxu1 }
 0x287   :  { %v1697_v13 = vpack.c.bf16 %v967_v16, %v966_v15  ;;  %v965_v20 = vmax.f32 %v841_v17, 0.0  ;;  %v862_v14 = vadd.f32 %v1230_v18, %v580_v53 }
 0x288   :  { %v853_v21 = vpop.f32.mrf.mxu1 }
 0x289   :  { %v1699_v11 = vpack.c.bf16 %v965_v20, %v964_v19  ;;  %v854_v22 = vadd.f32 %v853_v21, %v570_v58  ;;  %v970_v25 = vmax.f32 %v862_v14, 0.0 }
 0x28a   :  { %v1231_v12 = vpop.f32.mrf.mxu1 }
 0x28b   :  { %v865_v23 = vadd.f32 %v1231_v12, %v585_v55  ;;  %v968_v29 = vmax.f32 %v854_v22, 0.0 }
 0x28c   :  { %v856_v24 = vpop.f32.mrf.mxu1 }
 0x28d   :  { %v971_v26 = vmax.f32 %v865_v23, 0.0  ;;  %v857_v27 = vadd.f32 %v856_v24, %v575_v59 }
 0x28e   :  { %v1234_v28 = vpop.f32.mrf.mxu1 }
 0x28f   :  { %v1701_v30 = vpack.c.bf16 %v971_v26, %v970_v25  ;;  %v969_v31 = vmax.f32 %v857_v27, 0.0 }
 0x290   :  { %v869_v32 = vpop.f32.mrf.mxu1 }
 0x291   :  { %v1703_v33 = vpack.c.bf16 %v969_v31, %v968_v29 }
 0x292   :  { %v1235_v54 = vpop.f32.mrf.mxu1 }
 0x294   :  { %v872_v62 = vpop.f32.mrf.mxu1 }
 0x296   :  { %v1238_v63 = vpop.f32.mrf.mxu1 }
 0x297   :  { %v894_v21 = vadd.f32 %v1238_v63, %v1646_v36 }
 0x298   :  { %v885_v2 = vpop.f32.mrf.mxu1 }
 0x299   :  { %v978_v31 = vmax.f32 %v894_v21, 0.0 }
 0x29a   :  { %v1239_v53 = vpop.f32.mrf.mxu1 }
 0x29b   :  { %v897_v18 = vadd.f32 %v1239_v53, %v1648_v37 }
 0x29c   :  { %v888_v3 = vpop.f32.mrf.mxu1 }
 0x29d   :  { %v979_v23 = vmax.f32 %v897_v18, 0.0  ;;  %v889_v24 = vadd.f32 %v888_v3, %v1656_v41 }
 0x29e   :  { %v1705_v58 = vpop.f32.mrf.mxu1 }
 0x29f   :  { %v977_v18 = vmax.f32 %v889_v24, 0.0 }
 0x2a0   :  { %v1707_v55 = vpop.f32.mrf.mxu1 }
 0x2a2   :  { %v1709_v4 = vpop.f32.mrf.mxu1 }
 0x2a4   :  { %v1711_v59 = vpop.f32.mrf.mxu1 }
 0x2a6   :  { %v1246_v5 = vpop.f32.mrf.mxu1 }
 0x2a8   :  { %v917_v6 = vpop.f32.mrf.mxu1 }
 0x2aa   :  { %v1247_v7 = vpop.f32.mrf.mxu1 }
 0x2ac   :  { %v920_v8 = vpop.f32.mrf.mxu1 }
 0x2ae   :  { %v1250_v9 = vpop.f32.mrf.mxu1 }
 0x2af   :  { %v942_v36 = vadd.f32 %v1250_v9, %v1658_v42 }
 0x2b0   :  { %v933_v10 = vpop.f32.mrf.mxu1 }
 0x2b2   :  { %v1251_v15 = vpop.f32.mrf.mxu1 }
 0x2b3   :  { %v945_v26 = vadd.f32 %v1251_v15, %v1660_v43  ;;  %v878_v15 = vadd.f32 %v1234_v28, %v1662_v44  ;;  %v926_v44 = vadd.f32 %v1246_v5, %v1674_v50  ;;  %v910_v5 = vadd.f32 %v1705_v58, %v1689_v60 }
 0x2b4   :  { %v936_v16 = vpop.f32.mrf.mxu1 }
 0x2b5   :  { %v991_v41 = vmax.f32 %v945_v26, 0.0  ;;  %v937_v3 = vadd.f32 %v936_v16, %v1668_v47  ;;  %v974_v21 = vmax.f32 %v878_v15, 0.0  ;;  %v870_v47 = vadd.f32 %v869_v32, %v1670_v48 }
 0x2b6   :  { %v1254_v17 = vpop.f32.mrf.mxu1  ;;  %v913_v48 = vadd.f32 %v1709_v4, %v1691_v61 }
 0x2b7   :  { %v958_v20 = vadd.f32 %v1254_v17, %v1642_v34  ;;  %v886_v34 = vadd.f32 %v885_v2, %v1654_v40  ;;  %v1004_v17 = vpack.c.bf16 %v979_v23, %v978_v31  ;;  %v934_v40 = vadd.f32 %v933_v10, %v1666_v46 }
 0x2b8   :  { %v949_v19 = vpop.f32.mrf.mxu1  ;;  %v873_v2 = vadd.f32 %v872_v62, %v1672_v49  ;;  %v921_v10 = vadd.f32 %v920_v8, %v1687_v57  ;;  %v972_v49 = vmax.f32 %v870_v47, 0.0  ;;  %v986_v62 = vmax.f32 %v926_v44, 0.0 }
 0x2b9   :  { %v950_v12 = vadd.f32 %v949_v19, %v1650_v38  ;;  %v994_v27 = vmax.f32 %v958_v20, 0.0  ;;  %v990_v19 = vmax.f32 %v942_v36, 0.0  ;;  %v989_v20 = vmax.f32 %v937_v3, 0.0 }
 0x2ba   :  { %v1255_v14 = vpop.f32.mrf.mxu1  ;;  %v988_v28 = vmax.f32 %v934_v40, 0.0  ;;  %v985_v50 = vmax.f32 %v921_v10, 0.0  ;;  %v983_v57 = vmax.f32 %v913_v48, 0.0  ;;  %v905_v8 = vadd.f32 %v1711_v59, %v1695_v1 }
 0x2bb   :  { %v961_v22 = vadd.f32 %v1255_v14, %v1644_v35  ;;  %v992_v63 = vmax.f32 %v950_v12, 0.0  ;;  %v881_v35 = vadd.f32 %v1235_v54, %v1664_v45  ;;  %v929_v45 = vadd.f32 %v1247_v7, %v1676_v51 }
 0x2bc   :  { %v952_v25 = vpop.f32.mrf.mxu1  ;;  %v1010_v54 = vpack.c.bf16 %v991_v41, %v990_v19  ;;  %v973_v14 = vmax.f32 %v873_v2, 0.0  ;;  %v1009_v12 = vpack.c.bf16 %v989_v20, %v988_v28  ;;  %v918_v51 = vadd.f32 %v917_v6, %v1685_v56 }
 0x2bd   :  { %v995_v29 = vmax.f32 %v961_v22, 0.0  ;;  %v953_v37 = vadd.f32 %v952_v25, %v1652_v39  ;;  %v976_v39 = vmax.f32 %v886_v34, 0.0  ;;  %v975_v42 = vmax.f32 %v881_v35, 0.0 }
 0x2be   :  { %v987_v46 = vmax.f32 %v929_v45, 0.0  ;;  %v1001_v7 = vpack.c.bf16 %v973_v14, %v972_v49  ;;  %v984_v22 = vmax.f32 %v918_v51, 0.0  ;;  %v982_v56 = vmax.f32 %v910_v5, 0.0 }
 0x2bf   :  { %v1012_v53 = vpack.c.bf16 %v995_v29, %v994_v27  ;;  %v993_v38 = vmax.f32 %v953_v37, 0.0  ;;  %v1003_v9 = vpack.c.bf16 %v977_v18, %v976_v39  ;;  %v1002_v16 = vpack.c.bf16 %v975_v42, %v974_v21 }
 0x2c0   :  { %v1008_v32 = vpack.c.bf16 %v987_v46, %v986_v62  ;;  %v1007_v23 = vpack.c.bf16 %v985_v50, %v984_v22  ;;  %v902_v6 = vadd.f32 %v1707_v55, %v1693_v0  ;;  %v1006_v61 = vpack.c.bf16 %v983_v57, %v982_v56  ;;  %v1017_v55 = vpop.permute.xlu1 %1016 }
 0x2c1   :  { %v1011_v43 = vpack.c.bf16 %v993_v38, %v992_v63  ;;  %1166 = vmatprep.subr.bf16.mxu0 %v1012_v53  ;;  %v981_v4 = vmax.f32 %v905_v8, 0.0  ;;  %v1130_v1 = vcombine.low %v1681_v52, %v1681_v52 }
 0x2c2   :  { %1167 = vmatpush3.bf16.msra.mxu0 %v1004_v17  ;;  %v980_v24 = vmax.f32 %v902_v6, 0.0 }
 0x2c3   :  { %1168 = vmatprep.subr.bf16.mxu0 %v1011_v43 }
 0x2c4   :  { %v1005_v60 = vpack.c.bf16 %v981_v4, %v980_v24 }
 0x2c6   :  { %1169 = vmatpush3.bf16.msra.mxu0 %v1003_v9 }
 0x2c7   :  { %1170 = vmatprep.subr.bf16.mxu0 %v1010_v54 }
 0x2ca   :  { %1171 = vmatpush3.bf16.msra.mxu0 %v1002_v16 }
 0x2cb   :  { %1172 = vmatprep.subr.bf16.mxu0 %v1009_v12 }
 0x2ce   :  { %1173 = vmatpush3.bf16.msra.mxu0 %v1001_v7 }
 0x2cf   :  { %1174 = vmatprep.subr.bf16.mxu0 %v1008_v32 }
 0x2d2   :  { %1175 = vmatpush3.bf16.msra.mxu0 %v1701_v30 }
 0x2d3   :  { %1176 = vmatprep.subr.bf16.mxu0 %v1007_v23 }
 0x2d6   :  { %1177 = vmatpush3.bf16.msra.mxu0 %v1703_v33 }
 0x2d7   :  { %1178 = vmatprep.subr.bf16.mxu0 %v1006_v61 }
 0x2da   :  { %1179 = vmatpush3.bf16.msra.mxu0 %v1697_v13 }
 0x2db   :  { %1180 = vmatprep.subr.bf16.mxu0 %v1005_v60 }
 0x2de   :  { %1181 = vmatpush3.bf16.msra.mxu0 %v1699_v11 }
 0x2e1   :  { %1059 = vmatmul.mubr.bf16.vlgmr.msra.gmra.mxu0 %v1130_v1 }
 0x3a1   :  { %v1182_v30 = vpop.f32.mrf.mxu0 }
 0x3a3   :  { %v1183_v58 = vpop.f32.mrf.mxu0 }
 0x3a4   :  { %v1184_v0 = vadd.f32 %v1183_v58, %v1182_v30 }
 0x3a5   :  { %v1185_v59 = vpop.f32.mrf.mxu0 }
 0x3a6   :  { %v1061_v25 = vadd.f32 %v1184_v0, %v1017_v55 }
 0x3a7   :  { %v1186_v26 = vpop.f32.mrf.mxu0 }
 0x3a8   :  { %v1066_v33 = vrot.slane %v1061_v25, 4 }
 0x3aa   :  { %v1067_v27 = vmax.f32 %v1061_v25, %v1066_v33 }
 0x3ac   :  { %v1068_v29 = vrot.slane %v1067_v27, 2 }
 0x3ae   :  { %v1069_v37 = vmax.f32 %v1067_v27, %v1068_v29 }
 0x3b0   :  { %v1070_v31 = vrot.slane %v1069_v37, 1 }
 0x3b2   :  { %v1071_v13 = vmax.f32 %v1069_v37, %v1070_v31 }
 0x3b4   :  { %v1072_v34 = vsub.f32 %v1061_v25, %v1071_v13 }
 0x3b6   :  { %v1073_v36 = vmul.f32 1.442695, %v1072_v34 }
 0x3b8   :  { %1298 = vpow2.f32 %v1073_v36 }
 0x3c5   :  { %v1299_v52 = vpop.eup %1298 }
 0x3c6   :  { %v1075_v63 = vrot.slane %v1299_v52, 4 }
 0x3c8   :  { %v1076_v11 = vadd.f32 %v1299_v52, %v1075_v63 }
 0x3ca   :  { %v1077_v53 = vrot.slane %v1076_v11, 2 }
 0x3cc   :  { %v1078_v38 = vadd.f32 %v1077_v53, %v1076_v11 }
 0x3ce   :  { %v1079_v35 = vrot.slane %v1078_v38, 1 }
 0x3d0   :  { %v1080_v17 = vadd.f32 %v1079_v35, %v1078_v38 }
 0x3d2   :  { %1300 = vrcp.f32 %v1080_v17 }
 0x3df   :  { %v1301_v18 = vpop.eup %1300 }
 0x3e0   :  { %v1082_v41 = vmul.f32 %v1301_v18, %v1299_v52 }
 0x3e2   :  { %1083 = vst [vmem:[#allocation2] sm:$0xff] %v1082_v41 }
 0x3e3   :  { %1313 = shalt.err (!%p1310_p4)
}
 0x3e4   :  { %1093 = dma.vmem_to_hbm [thread:$0]  %s1091_s23, 128, %s1759_s9, [#allocation3]  }
 0x3e5   :  { %1322 = dma.done.wait [#allocation3], 128  }
 0x3e6   :  { %1323 = vsyncadd [#allocation3], 4294967168 }
 0x3e7   :  { %1097 = vsyncpa [#allocation3], 1 }

</bundles_post_ra>
